<compile_context>
chip_gen: v5e
topology: v5e:2x2
jax: 0.10.0
libtpu: 0.0.40
codegen_flags: <defaults>
</compile_context>

<pallas_src>
import jax
import jax.numpy as jnp
from jax.experimental import pallas as pl
from jax.experimental.pallas import tpu as pltpu


def _pair(v):
    return tuple(v) if isinstance(v, (tuple, list)) else (v, v)


def _round_up(x, m):
    return (x + m - 1) // m * m


def _ua_conv_kernel(pm_ref, pv_ref, w_ref, w2_ref, b_ref, ym_ref, yv_ref):
    """One tile of rows: two MXU matmuls sharing resident weights."""
    w = w_ref[...]        # (K, Cout)
    w2 = w2_ref[...]      # (K, Cout)
    b = b_ref[...]        # (1, Cout)
    ym_ref[...] = (jnp.dot(pm_ref[...], w,
                           preferred_element_type=jnp.float32)
                   + b).astype(ym_ref.dtype)
    yv_ref[...] = jnp.dot(pv_ref[...], w2,
                          preferred_element_type=jnp.float32).astype(yv_ref.dtype)


def ua_conv2d(x_mean, x_var, weight, bias=None, *, stride=1, padding=0,
              dilation=1, groups=1, block_m=512):
    """UAConv2d forward.

    x_mean, x_var: (B, Cin, H, W) float32 (NCHW, like the PyTorch module)
    weight: (Cout, Cin, KH, KW), bias: (Cout,) or None
    Returns [y_mean, y_var], each (B, Cout, OH, OW).
    """
    assert groups == 1  # TODO(synk): grouped convolution not implemented.
    assert x_mean.shape == x_var.shape

    B, Cin, H, W = x_mean.shape
    Cout, Cin_w, KH, KW = weight.shape
    assert Cin_w == Cin

    sh, sw = _pair(stride)
    ph, pw = _pair(padding)
    dh, dw = _pair(dilation)
    OH = (H + 2 * ph - dh * (KH - 1) - 1) // sh + 1
    OW = (W + 2 * pw - dw * (KW - 1) - 1) // sw + 1

    M = B * OH * OW
    K = Cin * KH * KW
    dtype = x_mean.dtype

    def im2col(x):
        xp = jnp.pad(x, ((0, 0), (0, 0), (ph, ph), (pw, pw)))
        cols = []
        for kh in range(KH):
            h0 = kh * dh
            h1 = h0 + (OH - 1) * sh + 1
            for kw in range(KW):
                w0 = kw * dw
                w1 = w0 + (OW - 1) * sw + 1
                cols.append(xp[:, :, h0:h1:sh, w0:w1:sw])  # (B, Cin, OH, OW)
        p = jnp.stack(cols, axis=2)          # (B, Cin, KH*KW, OH, OW)
        p = p.transpose(0, 3, 4, 1, 2)       # (B, OH, OW, Cin, KH*KW)
        return p.reshape(M, K)               # K ordered (cin, kh, kw)

    pm = im2col(x_mean)
    pv = im2col(x_var)

    # Large row tiles: amortize per-grid-step overhead; pad M so every grid
    # step is a full, unmasked tile.
    blk = min(block_m, _round_up(M, 8))
    Mp = _round_up(M, blk)
    if Mp != M:
        pm = jnp.pad(pm, ((0, Mp - M), (0, 0)))
        pv = jnp.pad(pv, ((0, Mp - M), (0, 0)))

    # Flattened weights, ordered (cin, kh, kw) to match the patch K ordering.
    w_flat = weight.reshape(Cout, K).T.astype(dtype)                   # (K, Cout)
    w2_flat = (weight.astype(jnp.float32) ** 2).reshape(Cout, K).T.astype(dtype)
    if bias is None:
        b2d = jnp.zeros((1, Cout), dtype=dtype)
    else:
        b2d = bias.reshape(1, Cout).astype(dtype)

    grid = (Mp // blk,)
    patch_spec = pl.BlockSpec((blk, K), lambda i: (i, 0))
    w_spec = pl.BlockSpec((K, Cout), lambda i: (0, 0))       # resident weights
    b_spec = pl.BlockSpec((1, Cout), lambda i: (0, 0))       # resident bias
    out_spec = pl.BlockSpec((blk, Cout), lambda i: (i, 0))

    ym2d, yv2d = pl.pallas_call(
        _ua_conv_kernel,
        out_shape=(jax.ShapeDtypeStruct((Mp, Cout), dtype),
                   jax.ShapeDtypeStruct((Mp, Cout), dtype)),
        grid=grid,
        in_specs=[patch_spec, patch_spec, w_spec, w_spec, b_spec],
        out_specs=[out_spec, out_spec],
        compiler_params=pltpu.CompilerParams(
            dimension_semantics=("parallel",)),
    )(pm, pv, w_flat, w2_flat, b2d)

    def col2im(y2d):
        y = y2d[:M].reshape(B, OH, OW, Cout)
        return y.transpose(0, 3, 1, 2)       # back to NCHW

    return [col2im(ym2d), col2im(yv2d)]


if __name__ == "__main__":
    key = jax.random.PRNGKey(0)
    k1, k2, k3, k4 = jax.random.split(key, 4)

    B, Cin, Cout, H, W = 2, 4, 8, 16, 16
    KH = KW = 3
    stride, padding, dilation = 1, 1, 1

    x_mean = jax.random.normal(k1, (B, Cin, H, W), dtype=jnp.float32)
    # Variances must be non-negative.
    x_var = jax.nn.softplus(
        jax.random.normal(k2, (B, Cin, H, W), dtype=jnp.float32))
    weight = jax.random.normal(k3, (Cout, Cin, KH, KW), dtype=jnp.float32) * 0.1
    bias = jax.random.normal(k4, (Cout,), dtype=jnp.float32) * 0.1

    y_mean, y_var = ua_conv2d(x_mean, x_var, weight, bias,
                              stride=stride, padding=padding,
                              dilation=dilation)
    jax.block_until_ready(y_mean)
    jax.block_until_ready(y_var)

    # Reference: XLA conv for both branches.
    dn = ('NCHW', 'OIHW', 'NCHW')
    ref_mean = jax.lax.conv_general_dilated(
        x_mean, weight, window_strides=(stride, stride),
        padding=[(padding, padding), (padding, padding)],
        rhs_dilation=(dilation, dilation),
        dimension_numbers=dn) + bias.reshape(1, Cout, 1, 1)
    ref_var = jax.lax.conv_general_dilated(
        x_var, weight ** 2, window_strides=(stride, stride),
        padding=[(padding, padding), (padding, padding)],
        rhs_dilation=(dilation, dilation),
        dimension_numbers=dn)

    assert y_mean.shape == (B, Cout, H, W) and y_var.shape == (B, Cout, H, W)
    assert jnp.allclose(y_mean, ref_mean, atol=1e-4, rtol=1e-4)
    assert jnp.allclose(y_var, ref_var, atol=1e-4, rtol=1e-4)

    print("KERNEL_OK")
</pallas_src>

<mosaic_0001>
module attributes {stable_mosaic.version = 11 : i64} {
  func.func @_ua_conv_kernel(%arg0: i32, %arg1: memref<512x36xf32, #tpu.memory_space<vmem>>, %arg2: memref<512x36xf32, #tpu.memory_space<vmem>>, %arg3: memref<36x8xf32, #tpu.memory_space<vmem>>, %arg4: memref<36x8xf32, #tpu.memory_space<vmem>>, %arg5: memref<1x8xf32, #tpu.memory_space<vmem>>, %arg6: memref<512x8xf32, #tpu.memory_space<vmem>>, %arg7: memref<512x8xf32, #tpu.memory_space<vmem>>) attributes {dimension_semantics = [#tpu.dimension_semantics<parallel>], iteration_bounds = array<i64: 1>, scalar_prefetch = 0 : i64, scratch_operands = 0 : i64, tpu.core_type = #tpu.core_type<tc>, window_params = [{transform_indices = @transform_0, window_bounds = array<i64: 512, 36>}, {transform_indices = @transform_1, window_bounds = array<i64: 512, 36>}, {pipeline_mode = #tpu.pipeline_mode<synchronous>, transform_indices = @transform_2, window_bounds = array<i64: 36, 8>}, {pipeline_mode = #tpu.pipeline_mode<synchronous>, transform_indices = @transform_3, window_bounds = array<i64: 36, 8>}, {pipeline_mode = #tpu.pipeline_mode<synchronous>, transform_indices = @transform_4, window_bounds = array<i64: 1, 8>}, {transform_indices = @transform_5, window_bounds = array<i64: 512, 8>}, {transform_indices = @transform_6, window_bounds = array<i64: 512, 8>}]} {
    %c0 = arith.constant 0 : index
    %c0_0 = arith.constant 0 : index
    %0 = vector.load %arg3[%c0, %c0_0] : memref<36x8xf32, #tpu.memory_space<vmem>>, vector<36x8xf32>
    %c0_1 = arith.constant 0 : index
    %c0_2 = arith.constant 0 : index
    %1 = vector.load %arg4[%c0_1, %c0_2] : memref<36x8xf32, #tpu.memory_space<vmem>>, vector<36x8xf32>
    %c0_3 = arith.constant 0 : index
    %c0_4 = arith.constant 0 : index
    %2 = vector.load %arg5[%c0_3, %c0_4] : memref<1x8xf32, #tpu.memory_space<vmem>>, vector<1x8xf32>
    %c0_5 = arith.constant 0 : index
    %c0_6 = arith.constant 0 : index
    %3 = vector.load %arg1[%c0_5, %c0_6] : memref<512x36xf32, #tpu.memory_space<vmem>>, vector<512x36xf32>
    %cst = arith.constant dense<0.000000e+00> : vector<512x8xf32>
    %4 = tpu.matmul %3, %0, %cst {dimension_numbers = #tpu.dot_dimension_numbers<[1], [0], [0], [1], [0, 0, 1, 1], [], []>} : vector<512x36xf32>, vector<36x8xf32>, vector<512x8xf32> -> vector<512x8xf32>
    %5 = vector.broadcast %2 : vector<1x8xf32> to vector<512x8xf32>
    %6 = arith.addf %4, %5 : vector<512x8xf32>
    %c0_7 = arith.constant 0 : index
    %c0_8 = arith.constant 0 : index
    %7 = vector.load %arg6[%c0_7, %c0_8] : memref<512x8xf32, #tpu.memory_space<vmem>>, vector<512x8xf32>
    tpu.vector_store %arg6[%c0_7, %c0_8], %6 {strides = array<i32>} : memref<512x8xf32, #tpu.memory_space<vmem>>, vector<512x8xf32>,
    %c0_9 = arith.constant 0 : index
    %c0_10 = arith.constant 0 : index
    %8 = vector.load %arg2[%c0_9, %c0_10] : memref<512x36xf32, #tpu.memory_space<vmem>>, vector<512x36xf32>
    %cst_11 = arith.constant dense<0.000000e+00> : vector<512x8xf32>
    %9 = tpu.matmul %8, %1, %cst_11 {dimension_numbers = #tpu.dot_dimension_numbers<[1], [0], [0], [1], [0, 0, 1, 1], [], []>} : vector<512x36xf32>, vector<36x8xf32>, vector<512x8xf32> -> vector<512x8xf32>
    %c0_12 = arith.constant 0 : index
    %c0_13 = arith.constant 0 : index
    %10 = vector.load %arg7[%c0_12, %c0_13] : memref<512x8xf32, #tpu.memory_space<vmem>>, vector<512x8xf32>
    tpu.vector_store %arg7[%c0_12, %c0_13], %9 {strides = array<i32>} : memref<512x8xf32, #tpu.memory_space<vmem>>, vector<512x8xf32>,
    return
  }
  func.func @transform_0(%arg0: i32) -> (i32, i32) {
    %c0_i32 = arith.constant 0 : i32
    %c0_i32_0 = arith.constant 0 : i32
    return %arg0, %c0_i32 : i32, i32
  }
  func.func @transform_1(%arg0: i32) -> (i32, i32) {
    %c0_i32 = arith.constant 0 : i32
    %c0_i32_0 = arith.constant 0 : i32
    return %arg0, %c0_i32 : i32, i32
  }
  func.func @transform_2(%arg0: i32) -> (i32, i32) {
    %c0_i32 = arith.constant 0 : i32
    %c0_i32_0 = arith.constant 0 : i32
    %c0_i32_1 = arith.constant 0 : i32
    return %c0_i32, %c0_i32_0 : i32, i32
  }
  func.func @transform_3(%arg0: i32) -> (i32, i32) {
    %c0_i32 = arith.constant 0 : i32
    %c0_i32_0 = arith.constant 0 : i32
    %c0_i32_1 = arith.constant 0 : i32
    return %c0_i32, %c0_i32_0 : i32, i32
  }
  func.func @transform_4(%arg0: i32) -> (i32, i32) {
    %c0_i32 = arith.constant 0 : i32
    %c0_i32_0 = arith.constant 0 : i32
    %c0_i32_1 = arith.constant 0 : i32
    return %c0_i32, %c0_i32_0 : i32, i32
  }
  func.func @transform_5(%arg0: i32) -> (i32, i32) {
    %c0_i32 = arith.constant 0 : i32
    %c0_i32_0 = arith.constant 0 : i32
    return %arg0, %c0_i32 : i32, i32
  }
  func.func @transform_6(%arg0: i32) -> (i32, i32) {
    %c0_i32 = arith.constant 0 : i32
    %c0_i32_0 = arith.constant 0 : i32
    return %arg0, %c0_i32 : i32, i32
  }
}

</mosaic_0001>

<bundles_post_ra>
// kernel: tpu_custom_call.1
= control target key start
LH: loop header
LB: loop body
LE: loop exit
PB: predicated region body
PF: predicated region fallthrough
CT: control target
= control target key end

     0   :  { %vm293_vm0 = vcmask 1043456   ;;  %vm100_vm1 = vcmask 293888   ;;  %vm506_vm2 = vcmask 64512   ;;  %s2410_s2 = inlined_call_operand.vmem [shape: f32[36,8], index: 2, kind: input, shape index: {}]   ;;  %s2411_s3 = inlined_call_operand.vmem [shape: f32[36,8], index: 3, kind: input, shape index: {}]   ;;  %s2412_s0 = inlined_call_operand.vmem [shape: f32[512,36], index: 0, kind: input, shape index: {}]   ;;  %s2413_s1 = inlined_call_operand.vmem [shape: f32[512,36], index: 1, kind: input, shape index: {}]   ;;  %s2414_s4 = inlined_call_operand.vmem [shape: f32[1,8], index: 4, kind: input, shape index: {}]   ;;  %s2415_s6 = inlined_call_operand.vmem [shape: f32[512,8], index: 6, kind: output, shape index: {1}]   ;;  %s2416_s5 = inlined_call_operand.vmem [shape: f32[512,8], index: 5, kind: output, shape index: {0}]  }
   0x1   :  { %v26_v0 = vld [vmem:[%s2410_s2 + $0x20] sm:$0xf]  ;;  %v25_v1 = vld [vmem:[%s2410_s2 + $0x18] sm:$0xff]  ;;  %v24_v4 = vld [vmem:[%s2410_s2 + $0x10] sm:$0xff] }
   0x2   :  { %v31_v2 = vld [vmem:[%s2411_s3 + $0x20] sm:$0xf]  ;;  %1241 = vmatpush.msk.msra.mxu2 %vm293_vm0, %v26_v0  ;;  %v30_v3 = vld [vmem:[%s2411_s3 + $0x18] sm:$0xff]  ;;  %1111 = vmatpush.msk.msra.mxu0 %vm293_vm0, %v26_v0  ;;  %v29_v5 = vld [vmem:[%s2411_s3 + $0x10] sm:$0xff] }
   0x3   :  { %1246 = vmatpush.msk.msra.mxu3 %vm293_vm0, %v31_v2  ;;  %1176 = vmatpush.msk.msra.mxu1 %vm293_vm0, %v31_v2  ;;  %v23_v6 = vld [vmem:[%s2410_s2 + $0x8] sm:$0xff]  ;;  %v22_v8 = vld [vmem:[%s2410_s2] sm:$0xff]  ;;  %v67_v18 = vld [vmem:[%s2412_s0 + $0x110] sm:$0xff] }
   0x4   :  { %1242 = vmatpush.msra.mxu2 %v25_v1  ;;  %309 = vmatpush.msra.mxu0 %v25_v1  ;;  %v28_v7 = vld [vmem:[%s2411_s3 + $0x8] sm:$0xff]  ;;  %v27_v9 = vld [vmem:[%s2411_s3] sm:$0xff]  ;;  %v605_v19 = vld [vmem:[%s2413_s1 + $0x110] sm:$0xff] }
   0x5   :  { %1247 = vmatpush.msra.mxu3 %v30_v3  ;;  %842 = vmatpush.msra.mxu1 %v30_v3  ;;  %v65_v10 = vld [vmem:[%s2412_s0 + $0x100] sm:$0xff]  ;;  %v66_v14 = vld [vmem:[%s2412_s0 + $0x108] sm:$0xff]  ;;  %v35_v20 = vld [vmem:[%s2412_s0 + $0x10] sm:$0xff] }
   0x6   :  { %1243 = vmatpush.msra.mxu2 %v24_v4  ;;  %310 = vmatpush.msra.mxu0 %v24_v4  ;;  %v603_v11 = vld [vmem:[%s2413_s1 + $0x100] sm:$0xff]  ;;  %v604_v15 = vld [vmem:[%s2413_s1 + $0x108] sm:$0xff]  ;;  %v573_v21 = vld [vmem:[%s2413_s1 + $0x10] sm:$0xff] }
   0x7   :  { %1248 = vmatpush.msra.mxu3 %v29_v5  ;;  %843 = vmatpush.msra.mxu1 %v29_v5  ;;  %v33_v12 = vld [vmem:[%s2412_s0] sm:$0xff]  ;;  %v34_v16 = vld [vmem:[%s2412_s0 + $0x8] sm:$0xff]  ;;  %v68_v22 = vld [vmem:[%s2412_s0 + $0x118] sm:$0xff] }
   0x8   :  { %1244 = vmatpush.msra.mxu2 %v23_v6  ;;  %311 = vmatpush.msra.mxu0 %v23_v6  ;;  %v571_v13 = vld [vmem:[%s2413_s1] sm:$0xff]  ;;  %v572_v17 = vld [vmem:[%s2413_s1 + $0x8] sm:$0xff]  ;;  %v606_v23 = vld [vmem:[%s2413_s1 + $0x118] sm:$0xff] }
   0x9   :  { %1249 = vmatpush.msra.mxu3 %v28_v7  ;;  %844 = vmatpush.msra.mxu1 %v28_v7  ;;  %v36_v24 = vld [vmem:[%s2412_s0 + $0x18] sm:$0xff]  ;;  %v69_v26 = vld [vmem:[%s2412_s0 + $0x120] sm:$0xff]  ;;  %v70_v30 = vld [vmem:[%s2412_s0 + $0x128] sm:$0xff] }
   0xa   :  { %1245 = vmatpush.msra.mxu2 %v22_v8  ;;  %312 = vmatpush.msra.mxu0 %v22_v8  ;;  %v574_v25 = vld [vmem:[%s2413_s1 + $0x18] sm:$0xff]  ;;  %v607_v27 = vld [vmem:[%s2413_s1 + $0x120] sm:$0xff]  ;;  %v608_v31 = vld [vmem:[%s2413_s1 + $0x128] sm:$0xff] }
   0xb   :  { %1250 = vmatpush.msra.mxu3 %v27_v9  ;;  %1144 = vmatmul.msk.f32.vlgmr.msra.gmra.mxu2 %vm100_vm1, %v65_v10  ;;  %v37_v28 = vld [vmem:[%s2412_s0 + $0x20] sm:$0xff]  ;;  %v38_v32 = vld [vmem:[%s2412_s0 + $0x28] sm:$0xff]  ;;  %v71_v34 = vld [vmem:[%s2412_s0 + $0x130] sm:$0xff] }
   0xc   :  { %1209 = vmatmul.msk.f32.vlgmr.msra.gmra.mxu3 %vm100_vm1, %v603_v11  ;;  %845 = vmatpush.msra.mxu1 %v27_v9  ;;  %v575_v29 = vld [vmem:[%s2413_s1 + $0x20] sm:$0xff]  ;;  %v576_v33 = vld [vmem:[%s2413_s1 + $0x28] sm:$0xff]  ;;  %v609_v35 = vld [vmem:[%s2413_s1 + $0x130] sm:$0xff] }
   0xd   :  { %1112 = vmatmul.msk.f32.vlgmr.msra.gmra.mxu0 %vm100_vm1, %v33_v12  ;;  %1177 = vmatmul.msk.f32.vlgmr.msra.gmra.mxu1 %vm100_vm1, %v571_v13  ;;  %v39_v36 = vld [vmem:[%s2412_s0 + $0x30] sm:$0xff]  ;;  %v72_v38 = vld [vmem:[%s2412_s0 + $0x138] sm:$0xff]  ;;  %v73_v42 = vld [vmem:[%s2412_s0 + $0x140] sm:$0xff] }
   0xe   :  { %v577_v37 = vld [vmem:[%s2413_s1 + $0x30] sm:$0xff]  ;;  %v610_v39 = vld [vmem:[%s2413_s1 + $0x138] sm:$0xff]  ;;  %v611_v43 = vld [vmem:[%s2413_s1 + $0x140] sm:$0xff] }
   0xf   :  { %v40_v40 = vld [vmem:[%s2412_s0 + $0x38] sm:$0xff]  ;;  %v41_v44 = vld [vmem:[%s2412_s0 + $0x40] sm:$0xff]  ;;  %v74_v46 = vld [vmem:[%s2412_s0 + $0x148] sm:$0xff] }
  0x10   :  { %v578_v41 = vld [vmem:[%s2413_s1 + $0x38] sm:$0xff]  ;;  %v579_v45 = vld [vmem:[%s2413_s1 + $0x40] sm:$0xff]  ;;  %v612_v47 = vld [vmem:[%s2413_s1 + $0x148] sm:$0xff] }
  0x11   :  { %v42_v48 = vld [vmem:[%s2412_s0 + $0x48] sm:$0xff]  ;;  %v75_v50 = vld [vmem:[%s2412_s0 + $0x150] sm:$0xff]  ;;  %v76_v54 = vld [vmem:[%s2412_s0 + $0x158] sm:$0xff] }
  0x12   :  { %v580_v49 = vld [vmem:[%s2413_s1 + $0x48] sm:$0xff]  ;;  %v613_v51 = vld [vmem:[%s2413_s1 + $0x150] sm:$0xff]  ;;  %v614_v55 = vld [vmem:[%s2413_s1 + $0x158] sm:$0xff] }
  0x13   :  { %1145 = vmatmul.msk.f32.gmra.mxu2 %vm100_vm1, %v66_v14  ;;  %v43_v52 = vld [vmem:[%s2412_s0 + $0x50] sm:$0xff]  ;;  %v44_v56 = vld [vmem:[%s2412_s0 + $0x58] sm:$0xff]  ;;  %v77_v58 = vld [vmem:[%s2412_s0 + $0x160] sm:$0xff] }
  0x14   :  { %1210 = vmatmul.msk.f32.gmra.mxu3 %vm100_vm1, %v604_v15  ;;  %v581_v53 = vld [vmem:[%s2413_s1 + $0x50] sm:$0xff]  ;;  %v582_v57 = vld [vmem:[%s2413_s1 + $0x58] sm:$0xff]  ;;  %v615_v59 = vld [vmem:[%s2413_s1 + $0x160] sm:$0xff] }
  0x15   :  { %1113 = vmatmul.msk.f32.gmra.mxu0 %vm100_vm1, %v34_v16  ;;  %1178 = vmatmul.msk.f32.gmra.mxu1 %vm100_vm1, %v572_v17  ;;  %v45_v60 = vld [vmem:[%s2412_s0 + $0x60] sm:$0xff]  ;;  %v78_v62 = vld [vmem:[%s2412_s0 + $0x168] sm:$0xff]  ;;  %v79_v2 = vld [vmem:[%s2412_s0 + $0x170] sm:$0xff] }
  0x16   :  { %v583_v61 = vld [vmem:[%s2413_s1 + $0x60] sm:$0xff]  ;;  %v616_v63 = vld [vmem:[%s2413_s1 + $0x168] sm:$0xff]  ;;  %v617_v3 = vld [vmem:[%s2413_s1 + $0x170] sm:$0xff] }
  0x17   :  { %v46_v0 = vld [vmem:[%s2412_s0 + $0x68] sm:$0xff]  ;;  %v47_v4 = vld [vmem:[%s2412_s0 + $0x70] sm:$0xff]  ;;  %v80_v6 = vld [vmem:[%s2412_s0 + $0x178] sm:$0xff] }
  0x18   :  { %v584_v1 = vld [vmem:[%s2413_s1 + $0x68] sm:$0xff]  ;;  %v585_v5 = vld [vmem:[%s2413_s1 + $0x70] sm:$0xff]  ;;  %v618_v7 = vld [vmem:[%s2413_s1 + $0x178] sm:$0xff] }
  0x19   :  { %v48_v8 = vld [vmem:[%s2412_s0 + $0x78] sm:$0xff]  ;;  %v1576_v10 = vld [vmem:[%s2414_s4] ss:$0 sm:$0xff] }
  0x1a   :  { %v586_v9 = vld [vmem:[%s2413_s1 + $0x78] sm:$0xff]  ;;  %v81_v11 = vld [vmem:[%s2412_s0 + $0x180] sm:$0xff] }
  0x1b   :  { %1146 = vmatmul.msk.f32.gmra.mxu2 %vm100_vm1, %v67_v18  ;;  %v619_v12 = vld [vmem:[%s2413_s1 + $0x180] sm:$0xff] }
  0x1c   :  { %1211 = vmatmul.msk.f32.gmra.mxu3 %vm100_vm1, %v605_v19  ;;  %v49_v15 = vld [vmem:[%s2412_s0 + $0x80] sm:$0xff] }
  0x1d   :  { %1114 = vmatmul.msk.f32.gmra.mxu0 %vm100_vm1, %v35_v20  ;;  %1179 = vmatmul.msk.f32.gmra.mxu1 %vm100_vm1, %v573_v21  ;;  %v587_v16 = vld [vmem:[%s2413_s1 + $0x80] sm:$0xff]  ;;  %v82_v21 = vld [vmem:[%s2412_s0 + $0x188] sm:$0xff] }
  0x23   :  { %1147 = vmatmul.msk.f32.gmra.mxu2 %vm100_vm1, %v68_v22  ;;  %v620_v22 = vld [vmem:[%s2413_s1 + $0x188] sm:$0xff] }
  0x24   :  { %1212 = vmatmul.msk.f32.gmra.mxu3 %vm100_vm1, %v606_v23 }
  0x25   :  { %1115 = vmatmul.msk.f32.gmra.mxu0 %vm100_vm1, %v36_v24  ;;  %1180 = vmatmul.msk.f32.gmra.mxu1 %vm100_vm1, %v574_v25  ;;  %v50_v25 = vld [vmem:[%s2412_s0 + $0x88] sm:$0xff] }
  0x2b   :  { %1148 = vmatmul.msk.f32.gmra.mxu2 %vm100_vm1, %v69_v26  ;;  %v588_v26 = vld [vmem:[%s2413_s1 + $0x88] sm:$0xff] }
  0x2c   :  { %1213 = vmatmul.msk.f32.gmra.mxu3 %vm100_vm1, %v607_v27 }
  0x2d   :  { %1116 = vmatmul.msk.f32.gmra.mxu0 %vm100_vm1, %v37_v28  ;;  %1181 = vmatmul.msk.f32.gmra.mxu1 %vm100_vm1, %v575_v29 }
  0x33   :  { %1149 = vmatmul.msk.f32.gmra.mxu2 %vm100_vm1, %v70_v30 }
  0x34   :  { %1214 = vmatmul.msk.f32.gmra.mxu3 %vm100_vm1, %v608_v31  ;;  %v83_v31 = vld [vmem:[%s2412_s0 + $0x190] sm:$0xff] }
  0x35   :  { %1117 = vmatmul.msk.f32.gmra.mxu0 %vm100_vm1, %v38_v32  ;;  %1182 = vmatmul.msk.f32.gmra.mxu1 %vm100_vm1, %v576_v33  ;;  %v621_v32 = vld [vmem:[%s2413_s1 + $0x190] sm:$0xff] }
  0x3b   :  { %1150 = vmatmul.msk.f32.gmra.mxu2 %vm100_vm1, %v71_v34 }
  0x3c   :  { %1215 = vmatmul.msk.f32.gmra.mxu3 %vm100_vm1, %v609_v35  ;;  %v51_v35 = vld [vmem:[%s2412_s0 + $0x90] sm:$0xff] }
  0x3d   :  { %1118 = vmatmul.msk.f32.gmra.mxu0 %vm100_vm1, %v39_v36  ;;  %1183 = vmatmul.msk.f32.gmra.mxu1 %vm100_vm1, %v577_v37  ;;  %v589_v36 = vld [vmem:[%s2413_s1 + $0x90] sm:$0xff] }
  0x43   :  { %1151 = vmatmul.msk.f32.gmra.mxu2 %vm100_vm1, %v72_v38 }
  0x44   :  { %1216 = vmatmul.msk.f32.gmra.mxu3 %vm100_vm1, %v610_v39 }
  0x45   :  { %1119 = vmatmul.msk.f32.gmra.mxu0 %vm100_vm1, %v40_v40  ;;  %1184 = vmatmul.msk.f32.gmra.mxu1 %vm100_vm1, %v578_v41  ;;  %v84_v41 = vld [vmem:[%s2412_s0 + $0x198] sm:$0xff] }
  0x4b   :  { %1152 = vmatmul.msk.f32.gmra.mxu2 %vm100_vm1, %v73_v42  ;;  %v622_v42 = vld [vmem:[%s2413_s1 + $0x198] sm:$0xff] }
  0x4c   :  { %1217 = vmatmul.msk.f32.gmra.mxu3 %vm100_vm1, %v611_v43 }
  0x4d   :  { %1120 = vmatmul.msk.f32.gmra.mxu0 %vm100_vm1, %v41_v44  ;;  %1185 = vmatmul.msk.f32.gmra.mxu1 %vm100_vm1, %v579_v45  ;;  %v52_v45 = vld [vmem:[%s2412_s0 + $0x98] sm:$0xff] }
  0x53   :  { %1153 = vmatmul.msk.f32.gmra.mxu2 %vm100_vm1, %v74_v46  ;;  %v590_v46 = vld [vmem:[%s2413_s1 + $0x98] sm:$0xff] }
  0x54   :  { %1218 = vmatmul.msk.f32.gmra.mxu3 %vm100_vm1, %v612_v47 }
  0x55   :  { %1121 = vmatmul.msk.f32.gmra.mxu0 %vm100_vm1, %v42_v48  ;;  %1186 = vmatmul.msk.f32.gmra.mxu1 %vm100_vm1, %v580_v49 }
  0x5b   :  { %1154 = vmatmul.msk.f32.gmra.mxu2 %vm100_vm1, %v75_v50 }
  0x5c   :  { %1219 = vmatmul.msk.f32.gmra.mxu3 %vm100_vm1, %v613_v51  ;;  %v85_v51 = vld [vmem:[%s2412_s0 + $0x1a0] sm:$0xff] }
  0x5d   :  { %1122 = vmatmul.msk.f32.gmra.mxu0 %vm100_vm1, %v43_v52  ;;  %1187 = vmatmul.msk.f32.gmra.mxu1 %vm100_vm1, %v581_v53  ;;  %v623_v52 = vld [vmem:[%s2413_s1 + $0x1a0] sm:$0xff] }
  0x63   :  { %1155 = vmatmul.msk.f32.gmra.mxu2 %vm100_vm1, %v76_v54 }
  0x64   :  { %1220 = vmatmul.msk.f32.gmra.mxu3 %vm100_vm1, %v614_v55  ;;  %v53_v55 = vld [vmem:[%s2412_s0 + $0xa0] sm:$0xff] }
  0x65   :  { %1123 = vmatmul.msk.f32.gmra.mxu0 %vm100_vm1, %v44_v56  ;;  %1188 = vmatmul.msk.f32.gmra.mxu1 %vm100_vm1, %v582_v57  ;;  %v591_v56 = vld [vmem:[%s2413_s1 + $0xa0] sm:$0xff] }
  0x6b   :  { %1156 = vmatmul.msk.f32.gmra.mxu2 %vm100_vm1, %v77_v58 }
  0x6c   :  { %1221 = vmatmul.msk.f32.gmra.mxu3 %vm100_vm1, %v615_v59 }
  0x6d   :  { %1124 = vmatmul.msk.f32.gmra.mxu0 %vm100_vm1, %v45_v60  ;;  %1189 = vmatmul.msk.f32.gmra.mxu1 %vm100_vm1, %v583_v61  ;;  %v86_v61 = vld [vmem:[%s2412_s0 + $0x1a8] sm:$0xff] }
  0x73   :  { %1157 = vmatmul.msk.f32.gmra.mxu2 %vm100_vm1, %v78_v62  ;;  %v624_v62 = vld [vmem:[%s2413_s1 + $0x1a8] sm:$0xff] }
  0x74   :  { %1222 = vmatmul.msk.f32.gmra.mxu3 %vm100_vm1, %v616_v63 }
  0x75   :  { %1125 = vmatmul.msk.f32.gmra.mxu0 %vm100_vm1, %v46_v0  ;;  %1190 = vmatmul.msk.f32.gmra.mxu1 %vm100_vm1, %v584_v1  ;;  %v54_v1 = vld [vmem:[%s2412_s0 + $0xa8] sm:$0xff] }
  0x7b   :  { %1158 = vmatmul.msk.f32.gmra.mxu2 %vm100_vm1, %v79_v2  ;;  %v592_v2 = vld [vmem:[%s2413_s1 + $0xa8] sm:$0xff] }
  0x7c   :  { %1223 = vmatmul.msk.f32.gmra.mxu3 %vm100_vm1, %v617_v3 }
  0x7d   :  { %1126 = vmatmul.msk.f32.gmra.mxu0 %vm100_vm1, %v47_v4  ;;  %1191 = vmatmul.msk.f32.gmra.mxu1 %vm100_vm1, %v585_v5 }
  0x83   :  { %1159 = vmatmul.msk.f32.gmra.mxu2 %vm100_vm1, %v80_v6 }
  0x84   :  { %1224 = vmatmul.msk.f32.gmra.mxu3 %vm100_vm1, %v618_v7  ;;  %v87_v7 = vld [vmem:[%s2412_s0 + $0x1b0] sm:$0xff] }
  0x85   :  { %1127 = vmatmul.msk.f32.gmra.mxu0 %vm100_vm1, %v48_v8  ;;  %1192 = vmatmul.msk.f32.gmra.mxu1 %vm100_vm1, %v586_v9  ;;  %v625_v8 = vld [vmem:[%s2413_s1 + $0x1b0] sm:$0xff] }
  0x8a   :  { %v314_v13 = vpop.f32.mrf.mxu0  ;;  %v847_v14 = vpop.f32.mrf.mxu1 }
  0x8b   :  { %1160 = vmatmul.msk.f32.gmra.mxu2 %vm100_vm1, %v81_v11  ;;  %v315_v17 = vadd.f32 %v1576_v10, %v314_v13  ;;  %1039 = vst.msk [vmem:[%s2415_s6] sm:$0xff] %vm506_vm2, %v847_v14  ;;  %v593_v13 = vld [vmem:[%s2413_s1 + $0xb0] sm:$0xff] }
  0x8c   :  { %1225 = vmatmul.msk.f32.gmra.mxu3 %vm100_vm1, %v619_v12  ;;  %v55_v12 = vld [vmem:[%s2412_s0 + $0xb0] sm:$0xff] }
  0x8d   :  { %507 = vst.msk [vmem:[%s2416_s5] sm:$0xff] %vm506_vm2, %v315_v17  ;;  %1128 = vmatmul.msk.f32.gmra.mxu0 %vm100_vm1, %v49_v15  ;;  %1193 = vmatmul.msk.f32.gmra.mxu1 %vm100_vm1, %v587_v16 }
  0x8e   :  { %v410_v18 = vpop.f32.mrf.mxu2 }
  0x8f   :  { %v943_v19 = vpop.f32.mrf.mxu3  ;;  %v411_v20 = vadd.f32 %v1576_v10, %v410_v18  ;;  %v88_v18 = vld [vmem:[%s2412_s0 + $0x1b8] sm:$0xff] }
  0x90   :  { %1071 = vst.msk [vmem:[%s2415_s6 + $0x100] sm:$0xff] %vm506_vm2, %v943_v19  ;;  %v626_v19 = vld [vmem:[%s2413_s1 + $0x1b8] sm:$0xff] }
  0x91   :  { %539 = vst.msk [vmem:[%s2416_s5 + $0x100] sm:$0xff] %vm506_vm2, %v411_v20 }
  0x92   :  { %v317_v23 = vpop.f32.mrf.mxu0  ;;  %v850_v24 = vpop.f32.mrf.mxu1 }
  0x93   :  { %1161 = vmatmul.msk.f32.gmra.mxu2 %vm100_vm1, %v82_v21  ;;  %v318_v27 = vadd.f32 %v1576_v10, %v317_v23  ;;  %1040 = vst.msk [vmem:[%s2415_s6 + $0x8] sm:$0xff] %vm506_vm2, %v850_v24  ;;  %v594_v23 = vld [vmem:[%s2413_s1 + $0xb8] sm:$0xff] }
  0x94   :  { %1226 = vmatmul.msk.f32.gmra.mxu3 %vm100_vm1, %v620_v22  ;;  %v56_v22 = vld [vmem:[%s2412_s0 + $0xb8] sm:$0xff] }
  0x95   :  { %508 = vst.msk [vmem:[%s2416_s5 + $0x8] sm:$0xff] %vm506_vm2, %v318_v27  ;;  %1129 = vmatmul.msk.f32.gmra.mxu0 %vm100_vm1, %v50_v25  ;;  %1194 = vmatmul.msk.f32.gmra.mxu1 %vm100_vm1, %v588_v26 }
  0x96   :  { %v413_v28 = vpop.f32.mrf.mxu2 }
  0x97   :  { %v946_v29 = vpop.f32.mrf.mxu3  ;;  %v414_v30 = vadd.f32 %v1576_v10, %v413_v28  ;;  %v89_v28 = vld [vmem:[%s2412_s0 + $0x1c0] sm:$0xff] }
  0x98   :  { %1072 = vst.msk [vmem:[%s2415_s6 + $0x108] sm:$0xff] %vm506_vm2, %v946_v29  ;;  %v627_v29 = vld [vmem:[%s2413_s1 + $0x1c0] sm:$0xff] }
  0x99   :  { %540 = vst.msk [vmem:[%s2416_s5 + $0x108] sm:$0xff] %vm506_vm2, %v414_v30 }
  0x9a   :  { %v320_v33 = vpop.f32.mrf.mxu0  ;;  %v853_v34 = vpop.f32.mrf.mxu1 }
  0x9b   :  { %1162 = vmatmul.msk.f32.gmra.mxu2 %vm100_vm1, %v83_v31  ;;  %v321_v37 = vadd.f32 %v1576_v10, %v320_v33  ;;  %1041 = vst.msk [vmem:[%s2415_s6 + $0x10] sm:$0xff] %vm506_vm2, %v853_v34  ;;  %v595_v33 = vld [vmem:[%s2413_s1 + $0xc0] sm:$0xff] }
  0x9c   :  { %1227 = vmatmul.msk.f32.gmra.mxu3 %vm100_vm1, %v621_v32  ;;  %v57_v32 = vld [vmem:[%s2412_s0 + $0xc0] sm:$0xff] }
  0x9d   :  { %509 = vst.msk [vmem:[%s2416_s5 + $0x10] sm:$0xff] %vm506_vm2, %v321_v37  ;;  %1130 = vmatmul.msk.f32.gmra.mxu0 %vm100_vm1, %v51_v35  ;;  %1195 = vmatmul.msk.f32.gmra.mxu1 %vm100_vm1, %v589_v36 }
  0x9e   :  { %v416_v38 = vpop.f32.mrf.mxu2 }
  0x9f   :  { %v949_v39 = vpop.f32.mrf.mxu3  ;;  %v417_v40 = vadd.f32 %v1576_v10, %v416_v38  ;;  %v90_v38 = vld [vmem:[%s2412_s0 + $0x1c8] sm:$0xff] }
  0xa0   :  { %1073 = vst.msk [vmem:[%s2415_s6 + $0x110] sm:$0xff] %vm506_vm2, %v949_v39  ;;  %v628_v39 = vld [vmem:[%s2413_s1 + $0x1c8] sm:$0xff] }
  0xa1   :  { %541 = vst.msk [vmem:[%s2416_s5 + $0x110] sm:$0xff] %vm506_vm2, %v417_v40 }
  0xa2   :  { %v323_v43 = vpop.f32.mrf.mxu0  ;;  %v856_v44 = vpop.f32.mrf.mxu1 }
  0xa3   :  { %1163 = vmatmul.msk.f32.gmra.mxu2 %vm100_vm1, %v84_v41  ;;  %v324_v47 = vadd.f32 %v1576_v10, %v323_v43  ;;  %1042 = vst.msk [vmem:[%s2415_s6 + $0x18] sm:$0xff] %vm506_vm2, %v856_v44  ;;  %v596_v43 = vld [vmem:[%s2413_s1 + $0xc8] sm:$0xff] }
  0xa4   :  { %1228 = vmatmul.msk.f32.gmra.mxu3 %vm100_vm1, %v622_v42  ;;  %v58_v42 = vld [vmem:[%s2412_s0 + $0xc8] sm:$0xff] }
  0xa5   :  { %510 = vst.msk [vmem:[%s2416_s5 + $0x18] sm:$0xff] %vm506_vm2, %v324_v47  ;;  %1131 = vmatmul.msk.f32.gmra.mxu0 %vm100_vm1, %v52_v45  ;;  %1196 = vmatmul.msk.f32.gmra.mxu1 %vm100_vm1, %v590_v46 }
  0xa6   :  { %v419_v48 = vpop.f32.mrf.mxu2 }
  0xa7   :  { %v952_v49 = vpop.f32.mrf.mxu3  ;;  %v420_v50 = vadd.f32 %v1576_v10, %v419_v48  ;;  %v91_v48 = vld [vmem:[%s2412_s0 + $0x1d0] sm:$0xff] }
  0xa8   :  { %1074 = vst.msk [vmem:[%s2415_s6 + $0x118] sm:$0xff] %vm506_vm2, %v952_v49  ;;  %v629_v49 = vld [vmem:[%s2413_s1 + $0x1d0] sm:$0xff] }
  0xa9   :  { %542 = vst.msk [vmem:[%s2416_s5 + $0x118] sm:$0xff] %vm506_vm2, %v420_v50 }
  0xaa   :  { %v326_v53 = vpop.f32.mrf.mxu0  ;;  %v859_v54 = vpop.f32.mrf.mxu1 }
  0xab   :  { %1164 = vmatmul.msk.f32.gmra.mxu2 %vm100_vm1, %v85_v51  ;;  %v327_v57 = vadd.f32 %v1576_v10, %v326_v53  ;;  %1043 = vst.msk [vmem:[%s2415_s6 + $0x20] sm:$0xff] %vm506_vm2, %v859_v54  ;;  %v597_v53 = vld [vmem:[%s2413_s1 + $0xd0] sm:$0xff] }
  0xac   :  { %1229 = vmatmul.msk.f32.gmra.mxu3 %vm100_vm1, %v623_v52  ;;  %v59_v52 = vld [vmem:[%s2412_s0 + $0xd0] sm:$0xff] }
  0xad   :  { %511 = vst.msk [vmem:[%s2416_s5 + $0x20] sm:$0xff] %vm506_vm2, %v327_v57  ;;  %1132 = vmatmul.msk.f32.gmra.mxu0 %vm100_vm1, %v53_v55  ;;  %1197 = vmatmul.msk.f32.gmra.mxu1 %vm100_vm1, %v591_v56 }
  0xae   :  { %v422_v58 = vpop.f32.mrf.mxu2 }
  0xaf   :  { %v955_v59 = vpop.f32.mrf.mxu3  ;;  %v423_v60 = vadd.f32 %v1576_v10, %v422_v58  ;;  %v92_v58 = vld [vmem:[%s2412_s0 + $0x1d8] sm:$0xff] }
  0xb0   :  { %1075 = vst.msk [vmem:[%s2415_s6 + $0x120] sm:$0xff] %vm506_vm2, %v955_v59  ;;  %v630_v59 = vld [vmem:[%s2413_s1 + $0x1d8] sm:$0xff] }
  0xb1   :  { %543 = vst.msk [vmem:[%s2416_s5 + $0x120] sm:$0xff] %vm506_vm2, %v423_v60 }
  0xb2   :  { %v329_v63 = vpop.f32.mrf.mxu0  ;;  %v862_v0 = vpop.f32.mrf.mxu1 }
  0xb3   :  { %1165 = vmatmul.msk.f32.gmra.mxu2 %vm100_vm1, %v86_v61  ;;  %v330_v3 = vadd.f32 %v1576_v10, %v329_v63  ;;  %1044 = vst.msk [vmem:[%s2415_s6 + $0x28] sm:$0xff] %vm506_vm2, %v862_v0  ;;  %v598_v63 = vld [vmem:[%s2413_s1 + $0xd8] sm:$0xff] }
  0xb4   :  { %1230 = vmatmul.msk.f32.gmra.mxu3 %vm100_vm1, %v624_v62  ;;  %v60_v62 = vld [vmem:[%s2412_s0 + $0xd8] sm:$0xff] }
  0xb5   :  { %512 = vst.msk [vmem:[%s2416_s5 + $0x28] sm:$0xff] %vm506_vm2, %v330_v3  ;;  %1133 = vmatmul.msk.f32.gmra.mxu0 %vm100_vm1, %v54_v1  ;;  %1198 = vmatmul.msk.f32.gmra.mxu1 %vm100_vm1, %v592_v2 }
  0xb6   :  { %v425_v4 = vpop.f32.mrf.mxu2 }
  0xb7   :  { %v958_v5 = vpop.f32.mrf.mxu3  ;;  %v426_v6 = vadd.f32 %v1576_v10, %v425_v4  ;;  %v93_v4 = vld [vmem:[%s2412_s0 + $0x1e0] sm:$0xff] }
  0xb8   :  { %1076 = vst.msk [vmem:[%s2415_s6 + $0x128] sm:$0xff] %vm506_vm2, %v958_v5  ;;  %v631_v5 = vld [vmem:[%s2413_s1 + $0x1e0] sm:$0xff] }
  0xb9   :  { %544 = vst.msk [vmem:[%s2416_s5 + $0x128] sm:$0xff] %vm506_vm2, %v426_v6 }
  0xba   :  { %v332_v9 = vpop.f32.mrf.mxu0  ;;  %v865_v11 = vpop.f32.mrf.mxu1 }
  0xbb   :  { %1166 = vmatmul.msk.f32.gmra.mxu2 %vm100_vm1, %v87_v7  ;;  %v333_v14 = vadd.f32 %v1576_v10, %v332_v9  ;;  %1045 = vst.msk [vmem:[%s2415_s6 + $0x30] sm:$0xff] %vm506_vm2, %v865_v11  ;;  %v599_v9 = vld [vmem:[%s2413_s1 + $0xe0] sm:$0xff] }
  0xbc   :  { %1231 = vmatmul.msk.f32.gmra.mxu3 %vm100_vm1, %v625_v8  ;;  %v61_v8 = vld [vmem:[%s2412_s0 + $0xe0] sm:$0xff] }
  0xbd   :  { %513 = vst.msk [vmem:[%s2416_s5 + $0x30] sm:$0xff] %vm506_vm2, %v333_v14  ;;  %1134 = vmatmul.msk.f32.gmra.mxu0 %vm100_vm1, %v55_v12  ;;  %1199 = vmatmul.msk.f32.gmra.mxu1 %vm100_vm1, %v593_v13 }
  0xbe   :  { %v428_v15 = vpop.f32.mrf.mxu2 }
  0xbf   :  { %v961_v16 = vpop.f32.mrf.mxu3  ;;  %v429_v17 = vadd.f32 %v1576_v10, %v428_v15  ;;  %v94_v15 = vld [vmem:[%s2412_s0 + $0x1e8] sm:$0xff] }
  0xc0   :  { %1077 = vst.msk [vmem:[%s2415_s6 + $0x130] sm:$0xff] %vm506_vm2, %v961_v16  ;;  %v632_v16 = vld [vmem:[%s2413_s1 + $0x1e8] sm:$0xff] }
  0xc1   :  { %545 = vst.msk [vmem:[%s2416_s5 + $0x130] sm:$0xff] %vm506_vm2, %v429_v17 }
  0xc2   :  { %v335_v20 = vpop.f32.mrf.mxu0  ;;  %v868_v21 = vpop.f32.mrf.mxu1 }
  0xc3   :  { %1167 = vmatmul.msk.f32.gmra.mxu2 %vm100_vm1, %v88_v18  ;;  %v336_v24 = vadd.f32 %v1576_v10, %v335_v20  ;;  %1046 = vst.msk [vmem:[%s2415_s6 + $0x38] sm:$0xff] %vm506_vm2, %v868_v21  ;;  %v600_v20 = vld [vmem:[%s2413_s1 + $0xe8] sm:$0xff] }
  0xc4   :  { %1232 = vmatmul.msk.f32.gmra.mxu3 %vm100_vm1, %v626_v19  ;;  %v62_v19 = vld [vmem:[%s2412_s0 + $0xe8] sm:$0xff] }
  0xc5   :  { %514 = vst.msk [vmem:[%s2416_s5 + $0x38] sm:$0xff] %vm506_vm2, %v336_v24  ;;  %1135 = vmatmul.msk.f32.gmra.mxu0 %vm100_vm1, %v56_v22  ;;  %1200 = vmatmul.msk.f32.gmra.mxu1 %vm100_vm1, %v594_v23 }
  0xc6   :  { %v431_v25 = vpop.f32.mrf.mxu2 }
  0xc7   :  { %v964_v26 = vpop.f32.mrf.mxu3  ;;  %v432_v27 = vadd.f32 %v1576_v10, %v431_v25  ;;  %v95_v25 = vld [vmem:[%s2412_s0 + $0x1f0] sm:$0xff] }
  0xc8   :  { %1078 = vst.msk [vmem:[%s2415_s6 + $0x138] sm:$0xff] %vm506_vm2, %v964_v26  ;;  %v633_v26 = vld [vmem:[%s2413_s1 + $0x1f0] sm:$0xff] }
  0xc9   :  { %546 = vst.msk [vmem:[%s2416_s5 + $0x138] sm:$0xff] %vm506_vm2, %v432_v27 }
  0xca   :  { %v338_v30 = vpop.f32.mrf.mxu0  ;;  %v871_v31 = vpop.f32.mrf.mxu1 }
  0xcb   :  { %1168 = vmatmul.msk.f32.gmra.mxu2 %vm100_vm1, %v89_v28  ;;  %v339_v34 = vadd.f32 %v1576_v10, %v338_v30  ;;  %1047 = vst.msk [vmem:[%s2415_s6 + $0x40] sm:$0xff] %vm506_vm2, %v871_v31  ;;  %v601_v30 = vld [vmem:[%s2413_s1 + $0xf0] sm:$0xff] }
  0xcc   :  { %1233 = vmatmul.msk.f32.gmra.mxu3 %vm100_vm1, %v627_v29  ;;  %v63_v29 = vld [vmem:[%s2412_s0 + $0xf0] sm:$0xff] }
  0xcd   :  { %515 = vst.msk [vmem:[%s2416_s5 + $0x40] sm:$0xff] %vm506_vm2, %v339_v34  ;;  %1136 = vmatmul.msk.f32.gmra.mxu0 %vm100_vm1, %v57_v32  ;;  %1201 = vmatmul.msk.f32.gmra.mxu1 %vm100_vm1, %v595_v33 }
  0xce   :  { %v434_v35 = vpop.f32.mrf.mxu2 }
  0xcf   :  { %v967_v36 = vpop.f32.mrf.mxu3  ;;  %v435_v37 = vadd.f32 %v1576_v10, %v434_v35  ;;  %v96_v35 = vld [vmem:[%s2412_s0 + $0x1f8] sm:$0xff] }
  0xd0   :  { %1079 = vst.msk [vmem:[%s2415_s6 + $0x140] sm:$0xff] %vm506_vm2, %v967_v36  ;;  %v634_v36 = vld [vmem:[%s2413_s1 + $0x1f8] sm:$0xff] }
  0xd1   :  { %547 = vst.msk [vmem:[%s2416_s5 + $0x140] sm:$0xff] %vm506_vm2, %v435_v37 }
  0xd2   :  { %v341_v40 = vpop.f32.mrf.mxu0  ;;  %v874_v41 = vpop.f32.mrf.mxu1 }
  0xd3   :  { %1169 = vmatmul.msk.f32.gmra.mxu2 %vm100_vm1, %v90_v38  ;;  %v342_v44 = vadd.f32 %v1576_v10, %v341_v40  ;;  %1048 = vst.msk [vmem:[%s2415_s6 + $0x48] sm:$0xff] %vm506_vm2, %v874_v41  ;;  %v602_v40 = vld [vmem:[%s2413_s1 + $0xf8] sm:$0xff] }
  0xd4   :  { %1234 = vmatmul.msk.f32.gmra.mxu3 %vm100_vm1, %v628_v39  ;;  %v64_v39 = vld [vmem:[%s2412_s0 + $0xf8] sm:$0xff] }
  0xd5   :  { %516 = vst.msk [vmem:[%s2416_s5 + $0x48] sm:$0xff] %vm506_vm2, %v342_v44  ;;  %1137 = vmatmul.msk.f32.gmra.mxu0 %vm100_vm1, %v58_v42  ;;  %1202 = vmatmul.msk.f32.gmra.mxu1 %vm100_vm1, %v596_v43 }
  0xd6   :  { %v437_v45 = vpop.f32.mrf.mxu2 }
  0xd7   :  { %v970_v46 = vpop.f32.mrf.mxu3  ;;  %v438_v47 = vadd.f32 %v1576_v10, %v437_v45 }
  0xd8   :  { %1080 = vst.msk [vmem:[%s2415_s6 + $0x148] sm:$0xff] %vm506_vm2, %v970_v46 }
  0xd9   :  { %548 = vst.msk [vmem:[%s2416_s5 + $0x148] sm:$0xff] %vm506_vm2, %v438_v47 }
  0xda   :  { %v344_v50 = vpop.f32.mrf.mxu0  ;;  %v877_v51 = vpop.f32.mrf.mxu1 }
  0xdb   :  { %1170 = vmatmul.msk.f32.gmra.mxu2 %vm100_vm1, %v91_v48  ;;  %v345_v54 = vadd.f32 %v1576_v10, %v344_v50  ;;  %1049 = vst.msk [vmem:[%s2415_s6 + $0x50] sm:$0xff] %vm506_vm2, %v877_v51 }
  0xdc   :  { %1235 = vmatmul.msk.f32.gmra.mxu3 %vm100_vm1, %v629_v49 }
  0xdd   :  { %517 = vst.msk [vmem:[%s2416_s5 + $0x50] sm:$0xff] %vm506_vm2, %v345_v54  ;;  %1138 = vmatmul.msk.f32.gmra.mxu0 %vm100_vm1, %v59_v52  ;;  %1203 = vmatmul.msk.f32.gmra.mxu1 %vm100_vm1, %v597_v53 }
  0xde   :  { %v440_v55 = vpop.f32.mrf.mxu2 }
  0xdf   :  { %v973_v56 = vpop.f32.mrf.mxu3  ;;  %v441_v57 = vadd.f32 %v1576_v10, %v440_v55 }
  0xe0   :  { %1081 = vst.msk [vmem:[%s2415_s6 + $0x150] sm:$0xff] %vm506_vm2, %v973_v56 }
  0xe1   :  { %549 = vst.msk [vmem:[%s2416_s5 + $0x150] sm:$0xff] %vm506_vm2, %v441_v57 }
  0xe2   :  { %v347_v60 = vpop.f32.mrf.mxu0  ;;  %v880_v61 = vpop.f32.mrf.mxu1 }
  0xe3   :  { %1171 = vmatmul.msk.f32.gmra.mxu2 %vm100_vm1, %v92_v58  ;;  %v348_v0 = vadd.f32 %v1576_v10, %v347_v60  ;;  %1050 = vst.msk [vmem:[%s2415_s6 + $0x58] sm:$0xff] %vm506_vm2, %v880_v61 }
  0xe4   :  { %1236 = vmatmul.msk.f32.gmra.mxu3 %vm100_vm1, %v630_v59 }
  0xe5   :  { %518 = vst.msk [vmem:[%s2416_s5 + $0x58] sm:$0xff] %vm506_vm2, %v348_v0  ;;  %1139 = vmatmul.msk.f32.gmra.mxu0 %vm100_vm1, %v60_v62  ;;  %1204 = vmatmul.msk.f32.gmra.mxu1 %vm100_vm1, %v598_v63 }
  0xe6   :  { %v443_v1 = vpop.f32.mrf.mxu2 }
  0xe7   :  { %v976_v2 = vpop.f32.mrf.mxu3  ;;  %v444_v3 = vadd.f32 %v1576_v10, %v443_v1 }
  0xe8   :  { %1082 = vst.msk [vmem:[%s2415_s6 + $0x158] sm:$0xff] %vm506_vm2, %v976_v2 }
  0xe9   :  { %550 = vst.msk [vmem:[%s2416_s5 + $0x158] sm:$0xff] %vm506_vm2, %v444_v3 }
  0xea   :  { %v350_v6 = vpop.f32.mrf.mxu0  ;;  %v883_v7 = vpop.f32.mrf.mxu1 }
  0xeb   :  { %1172 = vmatmul.msk.f32.gmra.mxu2 %vm100_vm1, %v93_v4  ;;  %v351_v11 = vadd.f32 %v1576_v10, %v350_v6  ;;  %1051 = vst.msk [vmem:[%s2415_s6 + $0x60] sm:$0xff] %vm506_vm2, %v883_v7 }
  0xec   :  { %1237 = vmatmul.msk.f32.gmra.mxu3 %vm100_vm1, %v631_v5 }
  0xed   :  { %519 = vst.msk [vmem:[%s2416_s5 + $0x60] sm:$0xff] %vm506_vm2, %v351_v11  ;;  %1140 = vmatmul.msk.f32.gmra.mxu0 %vm100_vm1, %v61_v8  ;;  %1205 = vmatmul.msk.f32.gmra.mxu1 %vm100_vm1, %v599_v9 }
  0xee   :  { %v446_v12 = vpop.f32.mrf.mxu2 }
  0xef   :  { %v979_v13 = vpop.f32.mrf.mxu3  ;;  %v447_v14 = vadd.f32 %v1576_v10, %v446_v12 }
  0xf0   :  { %1083 = vst.msk [vmem:[%s2415_s6 + $0x160] sm:$0xff] %vm506_vm2, %v979_v13 }
  0xf1   :  { %551 = vst.msk [vmem:[%s2416_s5 + $0x160] sm:$0xff] %vm506_vm2, %v447_v14 }
  0xf2   :  { %v353_v17 = vpop.f32.mrf.mxu0  ;;  %v886_v18 = vpop.f32.mrf.mxu1 }
  0xf3   :  { %1173 = vmatmul.msk.f32.gmra.mxu2 %vm100_vm1, %v94_v15  ;;  %v354_v21 = vadd.f32 %v1576_v10, %v353_v17  ;;  %1052 = vst.msk [vmem:[%s2415_s6 + $0x68] sm:$0xff] %vm506_vm2, %v886_v18 }
  0xf4   :  { %1238 = vmatmul.msk.f32.gmra.mxu3 %vm100_vm1, %v632_v16 }
  0xf5   :  { %520 = vst.msk [vmem:[%s2416_s5 + $0x68] sm:$0xff] %vm506_vm2, %v354_v21  ;;  %1141 = vmatmul.msk.f32.gmra.mxu0 %vm100_vm1, %v62_v19  ;;  %1206 = vmatmul.msk.f32.gmra.mxu1 %vm100_vm1, %v600_v20 }
  0xf6   :  { %v449_v22 = vpop.f32.mrf.mxu2 }
  0xf7   :  { %v982_v23 = vpop.f32.mrf.mxu3  ;;  %v450_v24 = vadd.f32 %v1576_v10, %v449_v22 }
  0xf8   :  { %1084 = vst.msk [vmem:[%s2415_s6 + $0x168] sm:$0xff] %vm506_vm2, %v982_v23 }
  0xf9   :  { %552 = vst.msk [vmem:[%s2416_s5 + $0x168] sm:$0xff] %vm506_vm2, %v450_v24 }
  0xfa   :  { %v356_v27 = vpop.f32.mrf.mxu0  ;;  %v889_v28 = vpop.f32.mrf.mxu1 }
  0xfb   :  { %1174 = vmatmul.msk.f32.gmra.mxu2 %vm100_vm1, %v95_v25  ;;  %v357_v31 = vadd.f32 %v1576_v10, %v356_v27  ;;  %1053 = vst.msk [vmem:[%s2415_s6 + $0x70] sm:$0xff] %vm506_vm2, %v889_v28 }
  0xfc   :  { %1239 = vmatmul.msk.f32.gmra.mxu3 %vm100_vm1, %v633_v26 }
  0xfd   :  { %521 = vst.msk [vmem:[%s2416_s5 + $0x70] sm:$0xff] %vm506_vm2, %v357_v31  ;;  %1142 = vmatmul.msk.f32.gmra.mxu0 %vm100_vm1, %v63_v29  ;;  %1207 = vmatmul.msk.f32.gmra.mxu1 %vm100_vm1, %v601_v30 }
  0xfe   :  { %v452_v32 = vpop.f32.mrf.mxu2 }
  0xff   :  { %v985_v33 = vpop.f32.mrf.mxu3  ;;  %v453_v34 = vadd.f32 %v1576_v10, %v452_v32 }
 0x100   :  { %1085 = vst.msk [vmem:[%s2415_s6 + $0x170] sm:$0xff] %vm506_vm2, %v985_v33 }
 0x101   :  { %553 = vst.msk [vmem:[%s2416_s5 + $0x170] sm:$0xff] %vm506_vm2, %v453_v34 }
 0x102   :  { %v359_v37 = vpop.f32.mrf.mxu0  ;;  %v892_v38 = vpop.f32.mrf.mxu1 }
 0x103   :  { %1175 = vmatmul.msk.f32.gmra.mxu2 %vm100_vm1, %v96_v35  ;;  %v360_v41 = vadd.f32 %v1576_v10, %v359_v37  ;;  %1054 = vst.msk [vmem:[%s2415_s6 + $0x78] sm:$0xff] %vm506_vm2, %v892_v38 }
 0x104   :  { %1240 = vmatmul.msk.f32.gmra.mxu3 %vm100_vm1, %v634_v36 }
 0x105   :  { %522 = vst.msk [vmem:[%s2416_s5 + $0x78] sm:$0xff] %vm506_vm2, %v360_v41  ;;  %1143 = vmatmul.msk.f32.gmra.mxu0 %vm100_vm1, %v64_v39  ;;  %1208 = vmatmul.msk.f32.gmra.mxu1 %vm100_vm1, %v602_v40 }
 0x106   :  { %v455_v42 = vpop.f32.mrf.mxu2 }
 0x107   :  { %v988_v43 = vpop.f32.mrf.mxu3  ;;  %v456_v44 = vadd.f32 %v1576_v10, %v455_v42 }
 0x108   :  { %1086 = vst.msk [vmem:[%s2415_s6 + $0x178] sm:$0xff] %vm506_vm2, %v988_v43 }
 0x109   :  { %554 = vst.msk [vmem:[%s2416_s5 + $0x178] sm:$0xff] %vm506_vm2, %v456_v44 }
 0x10a   :  { %v362_v45 = vpop.f32.mrf.mxu0  ;;  %v895_v46 = vpop.f32.mrf.mxu1 }
 0x10b   :  { %v363_v47 = vadd.f32 %v1576_v10, %v362_v45  ;;  %1055 = vst.msk [vmem:[%s2415_s6 + $0x80] sm:$0xff] %vm506_vm2, %v895_v46 }
 0x10d   :  { %523 = vst.msk [vmem:[%s2416_s5 + $0x80] sm:$0xff] %vm506_vm2, %v363_v47 }
 0x10e   :  { %v458_v48 = vpop.f32.mrf.mxu2 }
 0x10f   :  { %v991_v49 = vpop.f32.mrf.mxu3  ;;  %v459_v50 = vadd.f32 %v1576_v10, %v458_v48 }
 0x110   :  { %1087 = vst.msk [vmem:[%s2415_s6 + $0x180] sm:$0xff] %vm506_vm2, %v991_v49 }
 0x111   :  { %555 = vst.msk [vmem:[%s2416_s5 + $0x180] sm:$0xff] %vm506_vm2, %v459_v50 }
 0x112   :  { %v365_v51 = vpop.f32.mrf.mxu0  ;;  %v898_v52 = vpop.f32.mrf.mxu1 }
 0x113   :  { %v366_v53 = vadd.f32 %v1576_v10, %v365_v51  ;;  %1056 = vst.msk [vmem:[%s2415_s6 + $0x88] sm:$0xff] %vm506_vm2, %v898_v52 }
 0x115   :  { %524 = vst.msk [vmem:[%s2416_s5 + $0x88] sm:$0xff] %vm506_vm2, %v366_v53 }
 0x116   :  { %v461_v54 = vpop.f32.mrf.mxu2 }
 0x117   :  { %v994_v55 = vpop.f32.mrf.mxu3  ;;  %v462_v56 = vadd.f32 %v1576_v10, %v461_v54 }
 0x118   :  { %1088 = vst.msk [vmem:[%s2415_s6 + $0x188] sm:$0xff] %vm506_vm2, %v994_v55 }
 0x119   :  { %556 = vst.msk [vmem:[%s2416_s5 + $0x188] sm:$0xff] %vm506_vm2, %v462_v56 }
 0x11a   :  { %v368_v57 = vpop.f32.mrf.mxu0  ;;  %v901_v58 = vpop.f32.mrf.mxu1 }
 0x11b   :  { %v369_v59 = vadd.f32 %v1576_v10, %v368_v57  ;;  %1057 = vst.msk [vmem:[%s2415_s6 + $0x90] sm:$0xff] %vm506_vm2, %v901_v58 }
 0x11d   :  { %525 = vst.msk [vmem:[%s2416_s5 + $0x90] sm:$0xff] %vm506_vm2, %v369_v59 }
 0x11e   :  { %v464_v60 = vpop.f32.mrf.mxu2 }
 0x11f   :  { %v997_v61 = vpop.f32.mrf.mxu3  ;;  %v465_v62 = vadd.f32 %v1576_v10, %v464_v60 }
 0x120   :  { %1089 = vst.msk [vmem:[%s2415_s6 + $0x190] sm:$0xff] %vm506_vm2, %v997_v61 }
 0x121   :  { %557 = vst.msk [vmem:[%s2416_s5 + $0x190] sm:$0xff] %vm506_vm2, %v465_v62 }
 0x122   :  { %v371_v63 = vpop.f32.mrf.mxu0  ;;  %v904_v0 = vpop.f32.mrf.mxu1 }
 0x123   :  { %v372_v1 = vadd.f32 %v1576_v10, %v371_v63  ;;  %1058 = vst.msk [vmem:[%s2415_s6 + $0x98] sm:$0xff] %vm506_vm2, %v904_v0 }
 0x125   :  { %526 = vst.msk [vmem:[%s2416_s5 + $0x98] sm:$0xff] %vm506_vm2, %v372_v1 }
 0x126   :  { %v467_v2 = vpop.f32.mrf.mxu2 }
 0x127   :  { %v1000_v3 = vpop.f32.mrf.mxu3  ;;  %v468_v4 = vadd.f32 %v1576_v10, %v467_v2 }
 0x128   :  { %1090 = vst.msk [vmem:[%s2415_s6 + $0x198] sm:$0xff] %vm506_vm2, %v1000_v3 }
 0x129   :  { %558 = vst.msk [vmem:[%s2416_s5 + $0x198] sm:$0xff] %vm506_vm2, %v468_v4 }
 0x12a   :  { %v374_v5 = vpop.f32.mrf.mxu0  ;;  %v907_v6 = vpop.f32.mrf.mxu1 }
 0x12b   :  { %v375_v7 = vadd.f32 %v1576_v10, %v374_v5  ;;  %1059 = vst.msk [vmem:[%s2415_s6 + $0xa0] sm:$0xff] %vm506_vm2, %v907_v6 }
 0x12d   :  { %527 = vst.msk [vmem:[%s2416_s5 + $0xa0] sm:$0xff] %vm506_vm2, %v375_v7 }
 0x12e   :  { %v470_v8 = vpop.f32.mrf.mxu2 }
 0x12f   :  { %v1003_v9 = vpop.f32.mrf.mxu3  ;;  %v471_v11 = vadd.f32 %v1576_v10, %v470_v8 }
 0x130   :  { %1091 = vst.msk [vmem:[%s2415_s6 + $0x1a0] sm:$0xff] %vm506_vm2, %v1003_v9 }
 0x131   :  { %559 = vst.msk [vmem:[%s2416_s5 + $0x1a0] sm:$0xff] %vm506_vm2, %v471_v11 }
 0x132   :  { %v377_v12 = vpop.f32.mrf.mxu0  ;;  %v910_v13 = vpop.f32.mrf.mxu1 }
 0x133   :  { %v378_v14 = vadd.f32 %v1576_v10, %v377_v12  ;;  %1060 = vst.msk [vmem:[%s2415_s6 + $0xa8] sm:$0xff] %vm506_vm2, %v910_v13 }
 0x135   :  { %528 = vst.msk [vmem:[%s2416_s5 + $0xa8] sm:$0xff] %vm506_vm2, %v378_v14 }
 0x136   :  { %v473_v15 = vpop.f32.mrf.mxu2 }
 0x137   :  { %v1006_v16 = vpop.f32.mrf.mxu3  ;;  %v474_v17 = vadd.f32 %v1576_v10, %v473_v15 }
 0x138   :  { %1092 = vst.msk [vmem:[%s2415_s6 + $0x1a8] sm:$0xff] %vm506_vm2, %v1006_v16 }
 0x139   :  { %560 = vst.msk [vmem:[%s2416_s5 + $0x1a8] sm:$0xff] %vm506_vm2, %v474_v17 }
 0x13a   :  { %v380_v18 = vpop.f32.mrf.mxu0  ;;  %v913_v19 = vpop.f32.mrf.mxu1 }
 0x13b   :  { %v381_v20 = vadd.f32 %v1576_v10, %v380_v18  ;;  %1061 = vst.msk [vmem:[%s2415_s6 + $0xb0] sm:$0xff] %vm506_vm2, %v913_v19 }
 0x13d   :  { %529 = vst.msk [vmem:[%s2416_s5 + $0xb0] sm:$0xff] %vm506_vm2, %v381_v20 }
 0x13e   :  { %v476_v21 = vpop.f32.mrf.mxu2 }
 0x13f   :  { %v1009_v22 = vpop.f32.mrf.mxu3  ;;  %v477_v23 = vadd.f32 %v1576_v10, %v476_v21 }
 0x140   :  { %1093 = vst.msk [vmem:[%s2415_s6 + $0x1b0] sm:$0xff] %vm506_vm2, %v1009_v22 }
 0x141   :  { %561 = vst.msk [vmem:[%s2416_s5 + $0x1b0] sm:$0xff] %vm506_vm2, %v477_v23 }
 0x142   :  { %v383_v24 = vpop.f32.mrf.mxu0  ;;  %v916_v25 = vpop.f32.mrf.mxu1 }
 0x143   :  { %v384_v26 = vadd.f32 %v1576_v10, %v383_v24  ;;  %1062 = vst.msk [vmem:[%s2415_s6 + $0xb8] sm:$0xff] %vm506_vm2, %v916_v25 }
 0x145   :  { %530 = vst.msk [vmem:[%s2416_s5 + $0xb8] sm:$0xff] %vm506_vm2, %v384_v26 }
 0x146   :  { %v479_v27 = vpop.f32.mrf.mxu2 }
 0x147   :  { %v1012_v28 = vpop.f32.mrf.mxu3  ;;  %v480_v29 = vadd.f32 %v1576_v10, %v479_v27 }
 0x148   :  { %1094 = vst.msk [vmem:[%s2415_s6 + $0x1b8] sm:$0xff] %vm506_vm2, %v1012_v28 }
 0x149   :  { %562 = vst.msk [vmem:[%s2416_s5 + $0x1b8] sm:$0xff] %vm506_vm2, %v480_v29 }
 0x14a   :  { %v386_v30 = vpop.f32.mrf.mxu0  ;;  %v919_v31 = vpop.f32.mrf.mxu1 }
 0x14b   :  { %v387_v32 = vadd.f32 %v1576_v10, %v386_v30  ;;  %1063 = vst.msk [vmem:[%s2415_s6 + $0xc0] sm:$0xff] %vm506_vm2, %v919_v31 }
 0x14d   :  { %531 = vst.msk [vmem:[%s2416_s5 + $0xc0] sm:$0xff] %vm506_vm2, %v387_v32 }
 0x14e   :  { %v482_v33 = vpop.f32.mrf.mxu2 }
 0x14f   :  { %v1015_v34 = vpop.f32.mrf.mxu3  ;;  %v483_v35 = vadd.f32 %v1576_v10, %v482_v33 }
 0x150   :  { %1095 = vst.msk [vmem:[%s2415_s6 + $0x1c0] sm:$0xff] %vm506_vm2, %v1015_v34 }
 0x151   :  { %563 = vst.msk [vmem:[%s2416_s5 + $0x1c0] sm:$0xff] %vm506_vm2, %v483_v35 }
 0x152   :  { %v389_v36 = vpop.f32.mrf.mxu0  ;;  %v922_v37 = vpop.f32.mrf.mxu1 }
 0x153   :  { %v390_v38 = vadd.f32 %v1576_v10, %v389_v36  ;;  %1064 = vst.msk [vmem:[%s2415_s6 + $0xc8] sm:$0xff] %vm506_vm2, %v922_v37 }
 0x155   :  { %532 = vst.msk [vmem:[%s2416_s5 + $0xc8] sm:$0xff] %vm506_vm2, %v390_v38 }
 0x156   :  { %v485_v39 = vpop.f32.mrf.mxu2 }
 0x157   :  { %v1018_v40 = vpop.f32.mrf.mxu3  ;;  %v486_v41 = vadd.f32 %v1576_v10, %v485_v39 }
 0x158   :  { %1096 = vst.msk [vmem:[%s2415_s6 + $0x1c8] sm:$0xff] %vm506_vm2, %v1018_v40 }
 0x159   :  { %564 = vst.msk [vmem:[%s2416_s5 + $0x1c8] sm:$0xff] %vm506_vm2, %v486_v41 }
 0x15a   :  { %v392_v42 = vpop.f32.mrf.mxu0  ;;  %v925_v43 = vpop.f32.mrf.mxu1 }
 0x15b   :  { %v393_v44 = vadd.f32 %v1576_v10, %v392_v42  ;;  %1065 = vst.msk [vmem:[%s2415_s6 + $0xd0] sm:$0xff] %vm506_vm2, %v925_v43 }
 0x15d   :  { %533 = vst.msk [vmem:[%s2416_s5 + $0xd0] sm:$0xff] %vm506_vm2, %v393_v44 }
 0x15e   :  { %v488_v45 = vpop.f32.mrf.mxu2 }
 0x15f   :  { %v1021_v46 = vpop.f32.mrf.mxu3  ;;  %v489_v47 = vadd.f32 %v1576_v10, %v488_v45 }
 0x160   :  { %1097 = vst.msk [vmem:[%s2415_s6 + $0x1d0] sm:$0xff] %vm506_vm2, %v1021_v46 }
 0x161   :  { %565 = vst.msk [vmem:[%s2416_s5 + $0x1d0] sm:$0xff] %vm506_vm2, %v489_v47 }
 0x162   :  { %v395_v48 = vpop.f32.mrf.mxu0  ;;  %v928_v49 = vpop.f32.mrf.mxu1 }
 0x163   :  { %v396_v50 = vadd.f32 %v1576_v10, %v395_v48  ;;  %1066 = vst.msk [vmem:[%s2415_s6 + $0xd8] sm:$0xff] %vm506_vm2, %v928_v49 }
 0x165   :  { %534 = vst.msk [vmem:[%s2416_s5 + $0xd8] sm:$0xff] %vm506_vm2, %v396_v50 }
 0x166   :  { %v491_v51 = vpop.f32.mrf.mxu2 }
 0x167   :  { %v1024_v52 = vpop.f32.mrf.mxu3  ;;  %v492_v53 = vadd.f32 %v1576_v10, %v491_v51 }
 0x168   :  { %1098 = vst.msk [vmem:[%s2415_s6 + $0x1d8] sm:$0xff] %vm506_vm2, %v1024_v52 }
 0x169   :  { %566 = vst.msk [vmem:[%s2416_s5 + $0x1d8] sm:$0xff] %vm506_vm2, %v492_v53 }
 0x16a   :  { %v398_v54 = vpop.f32.mrf.mxu0  ;;  %v931_v55 = vpop.f32.mrf.mxu1 }
 0x16b   :  { %v399_v56 = vadd.f32 %v1576_v10, %v398_v54  ;;  %1067 = vst.msk [vmem:[%s2415_s6 + $0xe0] sm:$0xff] %vm506_vm2, %v931_v55 }
 0x16d   :  { %535 = vst.msk [vmem:[%s2416_s5 + $0xe0] sm:$0xff] %vm506_vm2, %v399_v56 }
 0x16e   :  { %v494_v57 = vpop.f32.mrf.mxu2 }
 0x16f   :  { %v1027_v58 = vpop.f32.mrf.mxu3  ;;  %v495_v59 = vadd.f32 %v1576_v10, %v494_v57 }
 0x170   :  { %1099 = vst.msk [vmem:[%s2415_s6 + $0x1e0] sm:$0xff] %vm506_vm2, %v1027_v58 }
 0x171   :  { %567 = vst.msk [vmem:[%s2416_s5 + $0x1e0] sm:$0xff] %vm506_vm2, %v495_v59 }
 0x172   :  { %v401_v60 = vpop.f32.mrf.mxu0  ;;  %v934_v61 = vpop.f32.mrf.mxu1 }
 0x173   :  { %v402_v62 = vadd.f32 %v1576_v10, %v401_v60  ;;  %1068 = vst.msk [vmem:[%s2415_s6 + $0xe8] sm:$0xff] %vm506_vm2, %v934_v61 }
 0x175   :  { %536 = vst.msk [vmem:[%s2416_s5 + $0xe8] sm:$0xff] %vm506_vm2, %v402_v62 }
 0x176   :  { %v497_v63 = vpop.f32.mrf.mxu2 }
 0x177   :  { %v1030_v0 = vpop.f32.mrf.mxu3  ;;  %v498_v1 = vadd.f32 %v1576_v10, %v497_v63 }
 0x178   :  { %1100 = vst.msk [vmem:[%s2415_s6 + $0x1e8] sm:$0xff] %vm506_vm2, %v1030_v0 }
 0x179   :  { %568 = vst.msk [vmem:[%s2416_s5 + $0x1e8] sm:$0xff] %vm506_vm2, %v498_v1 }
 0x17a   :  { %v404_v2 = vpop.f32.mrf.mxu0  ;;  %v937_v3 = vpop.f32.mrf.mxu1 }
 0x17b   :  { %v405_v4 = vadd.f32 %v1576_v10, %v404_v2  ;;  %1069 = vst.msk [vmem:[%s2415_s6 + $0xf0] sm:$0xff] %vm506_vm2, %v937_v3 }
 0x17d   :  { %537 = vst.msk [vmem:[%s2416_s5 + $0xf0] sm:$0xff] %vm506_vm2, %v405_v4 }
 0x17e   :  { %v500_v5 = vpop.f32.mrf.mxu2 }
 0x17f   :  { %v1033_v6 = vpop.f32.mrf.mxu3  ;;  %v501_v7 = vadd.f32 %v1576_v10, %v500_v5 }
 0x180   :  { %1101 = vst.msk [vmem:[%s2415_s6 + $0x1f0] sm:$0xff] %vm506_vm2, %v1033_v6 }
 0x181   :  { %569 = vst.msk [vmem:[%s2416_s5 + $0x1f0] sm:$0xff] %vm506_vm2, %v501_v7 }
 0x182   :  { %v407_v8 = vpop.f32.mrf.mxu0  ;;  %v940_v9 = vpop.f32.mrf.mxu1 }
 0x183   :  { %v408_v11 = vadd.f32 %v1576_v10, %v407_v8  ;;  %1070 = vst.msk [vmem:[%s2415_s6 + $0xf8] sm:$0xff] %vm506_vm2, %v940_v9 }
 0x185   :  { %538 = vst.msk [vmem:[%s2416_s5 + $0xf8] sm:$0xff] %vm506_vm2, %v408_v11 }
 0x186   :  { %v503_v12 = vpop.f32.mrf.mxu2 }
 0x187   :  { %v1036_v13 = vpop.f32.mrf.mxu3  ;;  %v504_v14 = vadd.f32 %v1576_v10, %v503_v12 }
 0x188   :  { %1102 = vst.msk [vmem:[%s2415_s6 + $0x1f8] sm:$0xff] %vm506_vm2, %v1036_v13 }
 0x189   :  { %570 = vst.msk [vmem:[%s2416_s5 + $0x1f8] sm:$0xff] %vm506_vm2, %v504_v14 }

</bundles_post_ra>
